<compile_context>
chip_gen: v5e
topology: v5e:2x2
jax: 0.10.0
libtpu: 0.0.40
codegen_flags: <defaults>
</compile_context>

<pallas_src>
import functools
import math

import jax
import jax.numpy as jnp
from jax import lax
from jax.experimental import pallas as pl

# Module hyper-parameters (n_e = 2**num_bits, e_dim forced to 128 by forward()).
N_E = 16
NUM_BITS = 4
E_DIM = 128
H = 5
W = 5
BETA = 0.25
SNR_DB = 10.0


# --------------------------------------------------------------------------
# Fused kernel: VQ distances + argmin + bit-channel + codebook re-gather.
# --------------------------------------------------------------------------
def _fused_vq_channel_kernel(z_ref, emb_ref, embt_ref, noise_ref,
                             min_d_ref, zq_ref, *, noise_std, num_bits):
    """Pixel-major, lane-dense shapes:
      z_ref     : (P, C)  f32, P = N*H*W pixels (sublanes), C = e_dim = 128 (lanes)
      emb_ref   : (K, C)  f32 codebook (for the re-gather matmul)
      embt_ref  : (C, K)  f32 codebook transposed (for the distance matmul)
      noise_ref : (P, B)  f32 AWGN samples, B = num_bits
      min_d_ref : (P, 1)  f32 per-pixel min_k (||e_k||^2 - 2 z_p.e_k)  [loss partials]
      zq_ref    : (P, C)  f32 z_q rebuilt from channel-corrupted indices
    """
    z = z_ref[...]                                               # (P, C)
    emb = emb_ref[...]                                           # (K, C)
    emb_t = embt_ref[...]                                        # (C, K)
    p = z.shape[0]
    k = emb.shape[0]

    # Distances WITHOUT the per-pixel ||z||^2 term (argmin-invariant):
    #   d'[p, k] = ||e_k||^2 - 2 * z_p . e_k        (single MXU matmul, lane-dense LHS)
    e2 = jnp.sum(emb_t * emb_t, axis=0, keepdims=True)           # (1, K)
    d = e2 - 2.0 * jnp.dot(z, emb_t, preferred_element_type=jnp.float32)  # (P, K)

    # Per-pixel min distance -> loss partials (reduced & scaled in the wrapper).
    min_d = jnp.min(d, axis=1, keepdims=True)                    # (P, 1)
    min_d_ref[...] = min_d

    # First-minimum argmin over the codebook axis (matches torch.argmin).
    # Kept in f32 so all reductions are plain f32 lane reductions.
    # NOTE: NaN distances would fall through to index k and decode as codeword 0.
    col_f = lax.broadcasted_iota(jnp.int32, (p, k), 1).astype(jnp.float32)
    idx = jnp.min(jnp.where(d == min_d, col_f, jnp.float32(k)),
                  axis=1, keepdims=True).astype(jnp.int32)       # (P, 1)

    # Bit-plane weights [2^(B-1) ... 2, 1] built from an iota (no dense constant,
    # no variable shifts) — hoisted, trace-time-unrolled, 4 tiny VPU ops.
    j = lax.broadcasted_iota(jnp.int32, (1, num_bits), 1)        # (1, B)
    w_i = jnp.zeros((1, num_bits), jnp.int32)
    for b in range(num_bits):
        w_i = jnp.where(j == b, 1 << (num_bits - 1 - b), w_i)
    w_f = w_i.astype(jnp.float32)

    # Bit-level AWGN channel: all bit planes of all pixels in one vector pass.
    bits = ((idx & w_i) != 0).astype(jnp.float32)                # (P, B) unipolar bits
    noisy = (2.0 * bits - 1.0) + noise_std * noise_ref[...]      # bipolar + noise
    r_bits = (noisy >= 0.0).astype(jnp.float32)                  # hard decision
    r_idx = jnp.sum(r_bits * w_f, axis=1, keepdims=True)         # (P, 1) received code id

    # Reconstruct z_q from (possibly bit-flipped) indices: one MXU matmul with a
    # 128-wide lane-dense output slab.
    one_hot = (col_f == r_idx).astype(jnp.float32)               # (P, K)
    zq_ref[...] = jnp.dot(one_hot, emb, preferred_element_type=jnp.float32)


# --------------------------------------------------------------------------
# Wrapper: layout plumbing (NCHW <-> pixel-major), noise draw, loss scaling.
# --------------------------------------------------------------------------
@jax.jit
def vq_with_channel_forward(z_nchw, embedding, key):
    n, c, h, w = z_nchw.shape
    assert c == E_DIM and h == H and w == W  # forward() hardcodes view(-1, 5, 5, 128)
    p_total = n * h * w

    # NCHW -> pixel-major (N*H*W, C): ~25 KB transpose handled by XLA (often fused).
    z_pix = jnp.transpose(z_nchw, (0, 2, 3, 1)).reshape(p_total, c)
    emb_t = jnp.transpose(embedding)                     # (C, K) tiny, hoisted here

    # Channel noise drawn outside the kernel (fixes prng_seed lowering failure,
    # keeps the EUP free inside the kernel). Same Gaussian bit-channel semantics.
    noise = jax.random.normal(key, (p_total, NUM_BITS), jnp.float32)
    noise_std = math.sqrt(0.5 / (10.0 ** (SNR_DB / 10.0)))

    kernel = functools.partial(
        _fused_vq_channel_kernel, noise_std=noise_std, num_bits=NUM_BITS)

    min_d, zq_pix = pl.pallas_call(
        kernel,
        out_shape=(
            jax.ShapeDtypeStruct((p_total, 1), jnp.float32),     # per-pixel loss partials
            jax.ShapeDtypeStruct((p_total, c), jnp.float32),     # z_q (pixel-major)
        ),
        in_specs=[
            pl.BlockSpec((p_total, c), lambda: (0, 0)),          # z, lane-dense
            pl.BlockSpec((N_E, c), lambda: (0, 0)),              # embedding
            pl.BlockSpec((c, N_E), lambda: (0, 0)),              # embedding.T
            pl.BlockSpec((p_total, NUM_BITS), lambda: (0, 0)),   # channel noise
        ],
        out_specs=(
            pl.BlockSpec((p_total, 1), lambda: (0, 0)),
            pl.BlockSpec((p_total, c), lambda: (0, 0)),
        ),
    )(z_pix, embedding, emb_t, noise)

    # loss = (1+beta) * mean((z_q - z)^2)
    #      = (1+beta) * (sum(z^2) + sum_p min_k(||e_k||^2 - 2 z_p.e_k)) / count
    count = n * c * h * w
    loss = (1.0 + BETA) * (jnp.sum(jnp.square(z_nchw)) + jnp.sum(min_d)) / count

    # Forward value: z_q_reconstructed_1 == z_q_reconstructed (STE only affects grads).
    z_q_reconstructed_1 = jnp.transpose(zq_pix.reshape(n, h, w, c), (0, 3, 1, 2))
    return loss, z_q_reconstructed_1


def make_embedding(key):
    # nn.Embedding(n_e, e_dim).weight.uniform_(-1/n_e, 1/n_e), deterministic.
    return jax.random.uniform(
        key, (N_E, E_DIM), jnp.float32, minval=-1.0 / N_E, maxval=1.0 / N_E
    )


if __name__ == "__main__":
    key = jax.random.PRNGKey(0)
    k_z, k_emb, k_noise = jax.random.split(key, 3)

    # NCHW input, e_dim=128 channels, 5x5 spatial (required by forward()).
    z = jax.random.normal(k_z, (2, E_DIM, H, W), jnp.float32)
    embedding = make_embedding(k_emb)

    loss, z_q_reconstructed_1 = vq_with_channel_forward(z, embedding, k_noise)
    jax.block_until_ready((loss, z_q_reconstructed_1))

    assert z_q_reconstructed_1.shape == (2, E_DIM, H, W)
    assert loss.shape == ()
    assert bool(jnp.isfinite(loss))
    assert bool(jnp.all(jnp.isfinite(z_q_reconstructed_1)))

    # ---- plain-JAX reference check (same wrapper-side channel noise) ----
    noise_std = math.sqrt(0.5 / (10.0 ** (SNR_DB / 10.0)))
    zf = jnp.transpose(z, (0, 2, 3, 1)).reshape(-1, E_DIM)
    d_ref = (jnp.sum(zf ** 2, axis=1, keepdims=True)
             + jnp.sum(embedding ** 2, axis=1)
             - 2.0 * zf @ embedding.T)
    idx_ref = jnp.argmin(d_ref, axis=1)
    loss_ref = (1.0 + BETA) * jnp.mean((embedding[idx_ref] - zf) ** 2)
    assert jnp.allclose(loss, loss_ref, rtol=1e-3, atol=1e-5)

    noise_ref = jax.random.normal(k_noise, (zf.shape[0], NUM_BITS), jnp.float32)
    w_bits = jnp.array([1 << (NUM_BITS - 1 - j) for j in range(NUM_BITS)], jnp.int32)
    bits_ref = ((idx_ref[:, None] & w_bits[None, :]) != 0).astype(jnp.float32)
    r_bits_ref = ((2.0 * bits_ref - 1.0 + noise_std * noise_ref) >= 0.0).astype(jnp.int32)
    r_idx_ref = jnp.sum(r_bits_ref * w_bits[None, :], axis=1)
    zq_ref = jnp.transpose(embedding[r_idx_ref].reshape(2, H, W, E_DIM), (0, 3, 1, 2))
    assert jnp.allclose(z_q_reconstructed_1, zq_ref, rtol=1e-5, atol=1e-5)

    print("KERNEL_OK")
</pallas_src>

<mosaic_0001>
module attributes {stable_mosaic.version = 11 : i64} {
  func.func @_fused_vq_channel_kernel(%arg0: memref<50x128xf32, #tpu.memory_space<vmem>>, %arg1: memref<16x128xf32, #tpu.memory_space<vmem>>, %arg2: memref<128x16xf32, #tpu.memory_space<vmem>>, %arg3: memref<50x4xf32, #tpu.memory_space<vmem>>, %arg4: memref<50x1xf32, #tpu.memory_space<vmem>>, %arg5: memref<50x128xf32, #tpu.memory_space<vmem>>) attributes {dimension_semantics = [], scalar_prefetch = 0 : i64, scratch_operands = 0 : i64, tpu.core_type = #tpu.core_type<tc>} {
    %c0 = arith.constant 0 : index
    %c0_0 = arith.constant 0 : index
    %0 = vector.load %arg0[%c0, %c0_0] : memref<50x128xf32, #tpu.memory_space<vmem>>, vector<50x128xf32>
    %c0_1 = arith.constant 0 : index
    %c0_2 = arith.constant 0 : index
    %1 = vector.load %arg1[%c0_1, %c0_2] : memref<16x128xf32, #tpu.memory_space<vmem>>, vector<16x128xf32>
    %c0_3 = arith.constant 0 : index
    %c0_4 = arith.constant 0 : index
    %2 = vector.load %arg2[%c0_3, %c0_4] : memref<128x16xf32, #tpu.memory_space<vmem>>, vector<128x16xf32>
    %3 = arith.mulf %2, %2 : vector<128x16xf32>
    %cst = arith.constant dense<0.000000e+00> : vector<16xf32>
    %4 = vector.multi_reduction <add>, %3, %cst [0] : vector<128x16xf32> to vector<16xf32>
    %5 = vector.shape_cast %4 : vector<16xf32> to vector<1x16xf32>
    %cst_5 = arith.constant dense<0.000000e+00> : vector<50x16xf32>
    %6 = tpu.matmul %0, %2, %cst_5 {dimension_numbers = #tpu.dot_dimension_numbers<[1], [0], [0], [1], [0, 0, 1, 1], [], []>} : vector<50x128xf32>, vector<128x16xf32>, vector<50x16xf32> -> vector<50x16xf32>
    %cst_6 = arith.constant 2.000000e+00 : f32
    %7 = vector.broadcast %cst_6 : f32 to vector<50x16xf32>
    %8 = arith.mulf %7, %6 : vector<50x16xf32>
    %9 = vector.broadcast %5 : vector<1x16xf32> to vector<50x16xf32>
    %10 = arith.subf %9, %8 : vector<50x16xf32>
    %cst_7 = arith.constant dense<0x7F800000> : vector<50xf32>
    %11 = vector.multi_reduction <minimumf>, %10, %cst_7 [1] : vector<50x16xf32> to vector<50xf32>
    %12 = vector.shape_cast %11 : vector<50xf32> to vector<50x1xf32>
    %c0_8 = arith.constant 0 : index
    %c0_9 = arith.constant 0 : index
    %13 = vector.load %arg4[%c0_8, %c0_9] : memref<50x1xf32, #tpu.memory_space<vmem>>, vector<50x1xf32>
    tpu.vector_store %arg4[%c0_8, %c0_9], %12 {strides = array<i32>} : memref<50x1xf32, #tpu.memory_space<vmem>>, vector<50x1xf32>,
    %14 = tpu.iota {dimensions = array<i32: 1>} : vector<50x16xi32>
    %15 = arith.sitofp %14 : vector<50x16xi32> to vector<50x16xf32>
    %16 = vector.broadcast %12 : vector<50x1xf32> to vector<50x16xf32>
    %17 = arith.cmpf oeq, %10, %16 : vector<50x16xf32>
    %cst_10 = arith.constant 1.600000e+01 : f32
    %18 = vector.broadcast %cst_10 : f32 to vector<50x16xf32>
    %19 = arith.select %17, %15, %18 : vector<50x16xi1>, vector<50x16xf32>
    %cst_11 = arith.constant dense<0x7F800000> : vector<50xf32>
    %20 = vector.multi_reduction <minimumf>, %19, %cst_11 [1] : vector<50x16xf32> to vector<50xf32>
    %21 = vector.shape_cast %20 : vector<50xf32> to vector<50x1xf32>
    %22 = arith.fptosi %21 : vector<50x1xf32> to vector<50x1xi32>
    %23 = tpu.iota {dimensions = array<i32: 1>} : vector<1x4xi32>
    %c0_i32 = arith.constant 0 : i32
    %24 = vector.broadcast %c0_i32 : i32 to vector<1x4xi32>
    %c0_i32_12 = arith.constant 0 : i32
    %25 = vector.broadcast %c0_i32_12 : i32 to vector<1x4xi32>
    %26 = arith.cmpi eq, %23, %25 : vector<1x4xi32>
    %c8_i32 = arith.constant 8 : i32
    %27 = vector.broadcast %c8_i32 : i32 to vector<1x4xi32>
    %28 = arith.select %26, %27, %24 : vector<1x4xi1>, vector<1x4xi32>
    %c1_i32 = arith.constant 1 : i32
    %29 = vector.broadcast %c1_i32 : i32 to vector<1x4xi32>
    %30 = arith.cmpi eq, %23, %29 : vector<1x4xi32>
    %c4_i32 = arith.constant 4 : i32
    %31 = vector.broadcast %c4_i32 : i32 to vector<1x4xi32>
    %32 = arith.select %30, %31, %28 : vector<1x4xi1>, vector<1x4xi32>
    %c2_i32 = arith.constant 2 : i32
    %33 = vector.broadcast %c2_i32 : i32 to vector<1x4xi32>
    %34 = arith.cmpi eq, %23, %33 : vector<1x4xi32>
    %c2_i32_13 = arith.constant 2 : i32
    %35 = vector.broadcast %c2_i32_13 : i32 to vector<1x4xi32>
    %36 = arith.select %34, %35, %32 : vector<1x4xi1>, vector<1x4xi32>
    %c3_i32 = arith.constant 3 : i32
    %37 = vector.broadcast %c3_i32 : i32 to vector<1x4xi32>
    %38 = arith.cmpi eq, %23, %37 : vector<1x4xi32>
    %c1_i32_14 = arith.constant 1 : i32
    %39 = vector.broadcast %c1_i32_14 : i32 to vector<1x4xi32>
    %40 = arith.select %38, %39, %36 : vector<1x4xi1>, vector<1x4xi32>
    %41 = arith.sitofp %40 : vector<1x4xi32> to vector<1x4xf32>
    %42 = vector.broadcast %22 : vector<50x1xi32> to vector<50x4xi32>
    %43 = vector.broadcast %40 : vector<1x4xi32> to vector<50x4xi32>
    %44 = arith.andi %42, %43 : vector<50x4xi32>
    %c0_i32_15 = arith.constant 0 : i32
    %45 = vector.broadcast %c0_i32_15 : i32 to vector<50x4xi32>
    %46 = arith.cmpi ne, %44, %45 : vector<50x4xi32>
    %47 = arith.extui %46 : vector<50x4xi1> to vector<50x4xi32>
    %48 = arith.sitofp %47 : vector<50x4xi32> to vector<50x4xf32>
    %cst_16 = arith.constant 2.000000e+00 : f32
    %49 = vector.broadcast %cst_16 : f32 to vector<50x4xf32>
    %50 = arith.mulf %49, %48 : vector<50x4xf32>
    %cst_17 = arith.constant 1.000000e+00 : f32
    %51 = vector.broadcast %cst_17 : f32 to vector<50x4xf32>
    %52 = arith.subf %50, %51 : vector<50x4xf32>
    %c0_18 = arith.constant 0 : index
    %c0_19 = arith.constant 0 : index
    %53 = vector.load %arg3[%c0_18, %c0_19] : memref<50x4xf32, #tpu.memory_space<vmem>>, vector<50x4xf32>
    %cst_20 = arith.constant 0.223606795 : f32
    %54 = vector.broadcast %cst_20 : f32 to vector<50x4xf32>
    %55 = arith.mulf %54, %53 : vector<50x4xf32>
    %56 = arith.addf %52, %55 : vector<50x4xf32>
    %cst_21 = arith.constant 0.000000e+00 : f32
    %57 = vector.broadcast %cst_21 : f32 to vector<50x4xf32>
    %58 = arith.cmpf oge, %56, %57 : vector<50x4xf32>
    %59 = arith.extui %58 : vector<50x4xi1> to vector<50x4xi32>
    %60 = arith.sitofp %59 : vector<50x4xi32> to vector<50x4xf32>
    %61 = vector.broadcast %41 : vector<1x4xf32> to vector<50x4xf32>
    %62 = arith.mulf %60, %61 : vector<50x4xf32>
    %cst_22 = arith.constant dense<0.000000e+00> : vector<50xf32>
    %63 = vector.multi_reduction <add>, %62, %cst_22 [1] : vector<50x4xf32> to vector<50xf32>
    %64 = vector.shape_cast %63 : vector<50xf32> to vector<50x1xf32>
    %65 = vector.broadcast %64 : vector<50x1xf32> to vector<50x16xf32>
    %66 = arith.cmpf oeq, %15, %65 : vector<50x16xf32>
    %67 = arith.extui %66 : vector<50x16xi1> to vector<50x16xi32>
    %68 = arith.sitofp %67 : vector<50x16xi32> to vector<50x16xf32>
    %cst_23 = arith.constant dense<0.000000e+00> : vector<50x128xf32>
    %69 = tpu.matmul %68, %1, %cst_23 {dimension_numbers = #tpu.dot_dimension_numbers<[1], [0], [0], [1], [0, 0, 1, 1], [], []>} : vector<50x16xf32>, vector<16x128xf32>, vector<50x128xf32> -> vector<50x128xf32>
    %c0_24 = arith.constant 0 : index
    %c0_25 = arith.constant 0 : index
    %70 = vector.load %arg5[%c0_24, %c0_25] : memref<50x128xf32, #tpu.memory_space<vmem>>, vector<50x128xf32>
    tpu.vector_store %arg5[%c0_24, %c0_25], %69 {strides = array<i32>} : memref<50x128xf32, #tpu.memory_space<vmem>>, vector<50x128xf32>,
    return
  }
}

</mosaic_0001>

<bundles_post_ra>
// kernel: vq_with_channel_forward.1
= control target key start
LH: loop header
LB: loop body
LE: loop exit
PB: predicated region body
PF: predicated region fallthrough
CT: control target
= control target key end

     0   :  { %vm60_vm0 = vcmask 130048   ;;  %vm168_vm1 = vcmask 123904   ;;  %vm172_vm2 = vcmask 7168   ;;  %vm179_vm7 = vcmask 1024   ;;  %s887_s2 = inlined_call_operand.vmem [shape: f32[128,16], index: 2, kind: input, shape index: {}]   ;;  %s888_s0 = inlined_call_operand.vmem [shape: f32[50,128], index: 0, kind: input, shape index: {}]   ;;  %s889_s4 = inlined_call_operand.vmem [shape: f32[50,1], index: 4, kind: output, shape index: {0}]   ;;  %s890_s3 = inlined_call_operand.vmem [shape: f32[50,4], index: 3, kind: input, shape index: {}]   ;;  %s891_s1 = inlined_call_operand.vmem [shape: f32[16,128], index: 1, kind: input, shape index: {}]   ;;  %s892_s5 = inlined_call_operand.vmem [shape: f32[50,128], index: 5, kind: output, shape index: {1}]  }
   0x1   :  { %v583_v0 = vld [vmem:[%s887_s2 + $0x78] sm:$0xff]  ;;  %v588_v1 = vld [vmem:[%s887_s2 + $0x70] sm:$0xff]  ;;  %v595_v2 = vld [vmem:[%s887_s2 + $0x68] sm:$0xff] }
   0x2   :  { %98 = vmatpush.msra.mxu0 %v583_v0  ;;  %479 = vmatpush.msra.mxu2 %v583_v0  ;;  %v603_v3 = vld [vmem:[%s887_s2 + $0x60] sm:$0xff]  ;;  %v611_v4 = vld [vmem:[%s887_s2 + $0x10] sm:$0xff]  ;;  %v616_v5 = vld [vmem:[%s887_s2 + $0x58] sm:$0xff]  ;;  %v57_v49 = vmul.f32 %v595_v2, %v595_v2 }
   0x3   :  { %480 = vmatpush.msra.mxu3 %v583_v0  ;;  %v46_v6 = vmul.f32 %v611_v4, %v611_v4  ;;  %v624_v7 = vld [vmem:[%s887_s2 + $0x8] sm:$0xff]  ;;  %v631_v8 = vld [vmem:[%s887_s2 + $0x18] sm:$0xff]  ;;  %v638_v10 = vld [vmem:[%s887_s2] sm:$0xff]  ;;  %v55_v43 = vmul.f32 %v616_v5, %v616_v5  ;;  %v56_v46 = vmul.f32 %v603_v3, %v603_v3 }
   0x4   :  { %99 = vmatpush.msra.mxu0 %v588_v1  ;;  %481 = vmatpush.msra.mxu2 %v588_v1  ;;  %v45_v9 = vmul.f32 %v624_v7, %v624_v7  ;;  %v38_v11 = vld [vmem:[%s887_s2 + $0x50] sm:$0xff]  ;;  %v47_v12 = vmul.f32 %v631_v8, %v631_v8  ;;  %v44_v13 = vmul.f32 %v638_v10, %v638_v10  ;;  %v32_v14 = vld [vmem:[%s887_s2 + $0x20] sm:$0xff]  ;;  %v37_v16 = vld [vmem:[%s887_s2 + $0x48] sm:$0xff]  ;;  %v86_v57 = vsel %vm60_vm0, %v57_v49, 0.0 }
   0x5   :  { %482 = vmatpush.msra.mxu3 %v588_v1  ;;  %v48_v17 = vmul.f32 %v32_v14, %v32_v14  ;;  %v64_v18 = vsel %vm60_vm0, %v46_v6, 0.0  ;;  %v33_v20 = vld [vmem:[%s887_s2 + $0x28] sm:$0xff]  ;;  %v36_v22 = vld [vmem:[%s887_s2 + $0x40] sm:$0xff]  ;;  %v34_v25 = vld [vmem:[%s887_s2 + $0x30] sm:$0xff]  ;;  %v53_v37 = vmul.f32 %v37_v16, %v37_v16  ;;  %v54_v40 = vmul.f32 %v38_v11, %v38_v11 }
   0x6   :  { %100 = vmatpush.msra.mxu0 %v595_v2  ;;  %483 = vmatpush.msra.mxu2 %v595_v2  ;;  %v62_v15 = vsel %vm60_vm0, %v45_v9, 0.0  ;;  %v61_v19 = vsel %vm60_vm0, %v44_v13, 0.0  ;;  %v49_v23 = vmul.f32 %v33_v20, %v33_v20  ;;  %v66_v24 = vsel %vm60_vm0, %v47_v12, 0.0  ;;  %v35_v27 = vld [vmem:[%s887_s2 + $0x38] sm:$0xff]  ;;  %v19_v52 = vld [vmem:[%s888_s0] sm:$0xff]  ;;  %v21_v53 = vld [vmem:[%s888_s0 + $0x10] sm:$0xff] }
   0x7   :  { %484 = vmatpush.msra.mxu3 %v595_v2  ;;  %v63_v21 = vadd.f32 %v62_v15, %v61_v19  ;;  %v50_v28 = vmul.f32 %v34_v25, %v34_v25  ;;  %v68_v29 = vsel %vm60_vm0, %v48_v17, 0.0  ;;  %v51_v31 = vmul.f32 %v35_v27, %v35_v27  ;;  %v24_v56 = vld [vmem:[%s888_s0 + $0x28] sm:$0xff]  ;;  %v22_v61 = vld [vmem:[%s888_s0 + $0x18] sm:$0xff]  ;;  %v25_v62 = vld [vmem:[%s888_s0 + $0x30] sm:$0x3] }
   0x8   :  { %101 = vmatpush.msra.mxu0 %v603_v3  ;;  %485 = vmatpush.msra.mxu2 %v603_v3  ;;  %v70_v32 = vsel %vm60_vm0, %v49_v23, 0.0  ;;  %v52_v34 = vmul.f32 %v36_v22, %v36_v22  ;;  %v78_v44 = vsel %vm60_vm0, %v53_v37, 0.0  ;;  %v80_v47 = vsel %vm60_vm0, %v54_v40, 0.0  ;;  %v20_v60 = vld [vmem:[%s888_s0 + $0x8] sm:$0xff]  ;;  %v23_v63 = vld [vmem:[%s888_s0 + $0x20] sm:$0xff] }
   0x9   :  { %486 = vmatpush.msra.mxu3 %v603_v3  ;;  %v65_v26 = vadd.f32 %v64_v18, %v63_v21  ;;  %v72_v35 = vsel %vm60_vm0, %v50_v28, 0.0  ;;  %v74_v38 = vsel %vm60_vm0, %v51_v31, 0.0  ;;  %v82_v50 = vsel %vm60_vm0, %v55_v43, 0.0 }
   0xa   :  { %102 = vmatpush.msra.mxu0 %v616_v5  ;;  %487 = vmatpush.msra.mxu2 %v616_v5  ;;  %v76_v41 = vsel %vm60_vm0, %v52_v34, 0.0  ;;  %v84_v54 = vsel %vm60_vm0, %v56_v46, 0.0  ;;  %v58_v2 = vmul.f32 %v588_v1, %v588_v1  ;;  %v59_v3 = vmul.f32 %v583_v0, %v583_v0 }
   0xb   :  { %488 = vmatpush.msra.mxu3 %v616_v5  ;;  %v67_v30 = vadd.f32 %v66_v24, %v65_v26  ;;  %v181_v40 = vlaneseq }
   0xc   :  { %103 = vmatpush.msra.mxu0 %v38_v11  ;;  %489 = vmatpush.msra.mxu2 %v38_v11  ;;  %v90_v5 = vsel %vm60_vm0, %v59_v3, 0.0 }
   0xd   :  { %490 = vmatpush.msra.mxu3 %v38_v11  ;;  %v69_v33 = vadd.f32 %v68_v29, %v67_v30 }
   0xe   :  { %104 = vmatpush.msra.mxu0 %v37_v16  ;;  %491 = vmatpush.msra.mxu2 %v37_v16 }
   0xf   :  { %492 = vmatpush.msra.mxu3 %v37_v16  ;;  %v71_v36 = vadd.f32 %v70_v32, %v69_v33 }
  0x10   :  { %105 = vmatpush.msra.mxu0 %v36_v22  ;;  %493 = vmatpush.msra.mxu2 %v36_v22 }
  0x11   :  { %494 = vmatpush.msra.mxu3 %v36_v22  ;;  %v73_v39 = vadd.f32 %v72_v35, %v71_v36 }
  0x12   :  { %106 = vmatpush.msra.mxu0 %v35_v27  ;;  %495 = vmatpush.msra.mxu2 %v35_v27 }
  0x13   :  { %496 = vmatpush.msra.mxu3 %v35_v27  ;;  %v75_v42 = vadd.f32 %v74_v38, %v73_v39 }
  0x14   :  { %107 = vmatpush.msra.mxu0 %v34_v25  ;;  %497 = vmatpush.msra.mxu2 %v34_v25 }
  0x15   :  { %498 = vmatpush.msra.mxu3 %v34_v25  ;;  %v77_v45 = vadd.f32 %v76_v41, %v75_v42  ;;  %v182_v41 = vand.u32 127, %v181_v40 }
  0x16   :  { %108 = vmatpush.msra.mxu0 %v33_v20  ;;  %499 = vmatpush.msra.mxu2 %v33_v20 }
  0x17   :  { %500 = vmatpush.msra.mxu3 %v33_v20  ;;  %v79_v48 = vadd.f32 %v78_v44, %v77_v45  ;;  %v735_v42 = vcvt.s32.f32 %v182_v41  ;;  %vm226_vm11 = vcmp.eq.s32.totalorder %v182_v41, 0  ;;  %vm228_vm12 = vcmp.eq.s32.totalorder %v182_v41, 1 }
  0x18   :  { %109 = vmatpush.msra.mxu0 %v32_v14  ;;  %501 = vmatpush.msra.mxu2 %v32_v14  ;;  %vm230_vm13 = vcmp.eq.s32.totalorder %v182_v41, 2  ;;  %vm232_vm14 = vcmp.eq.s32.totalorder %v182_v41, 3 }
  0x19   :  { %502 = vmatpush.msra.mxu3 %v32_v14  ;;  %v81_v51 = vadd.f32 %v80_v47, %v79_v48 }
  0x1a   :  { %110 = vmatpush.msra.mxu0 %v631_v8  ;;  %503 = vmatpush.msra.mxu2 %v631_v8 }
  0x1b   :  { %504 = vmatpush.msra.mxu3 %v631_v8  ;;  %v83_v55 = vadd.f32 %v82_v50, %v81_v51 }
  0x1c   :  { %111 = vmatpush.msra.mxu0 %v611_v4  ;;  %505 = vmatpush.msra.mxu2 %v611_v4 }
  0x1d   :  { %506 = vmatpush.msra.mxu3 %v611_v4  ;;  %v85_v58 = vadd.f32 %v84_v54, %v83_v55  ;;  %v88_v4 = vsel %vm60_vm0, %v58_v2, 0.0  ;;  %v548_v2 = vmov 0  }
  0x1e   :  { %112 = vmatpush.msra.mxu0 %v624_v7  ;;  %507 = vmatpush.msra.mxu2 %v624_v7  ;;  %v227_v3 = vsel %vm226_vm11, 8, %v548_v2 }
  0x1f   :  { %508 = vmatpush.msra.mxu3 %v624_v7  ;;  %v87_v59 = vadd.f32 %v86_v57, %v85_v58 }
  0x20   :  { %113 = vmatpush.msra.mxu0 %v638_v10  ;;  %509 = vmatpush.msra.mxu2 %v638_v10 }
  0x21   :  { %114 = vmatmul.f32.vlgmr.msra.gmra.mxu0 %v19_v52  ;;  %120 = vmatmul.f32.vlgmr.msra.gmra.mxu2 %v21_v53  ;;  %v89_v6 = vadd.f32 %v88_v4, %v87_v59  ;;  %v229_v4 = vsel %vm228_vm12, 4, %v227_v3 }
  0x22   :  { %510 = vmatpush.msra.mxu3 %v638_v10 }
  0x23   :  { %129 = vmatmul.f32.vlgmr.msra.gmra.mxu3 %v24_v56  ;;  %v91_v7 = vadd.f32 %v90_v5, %v89_v6  ;;  %v231_v5 = vsel %vm230_vm13, 2, %v229_v4 }
  0x25   :  { %v92_v8 = vrot.slane %v91_v7, 4 }
  0x27   :  { %v93_v9 = vadd.f32 %v92_v8, %v91_v7 }
  0x29   :  { %117 = vmatmul.f32.gmra.mxu0 %v20_v60  ;;  %123 = vmatmul.f32.gmra.mxu2 %v22_v61  ;;  %v94_v10 = vrot.slane %v93_v9, 2 }
  0x2b   :  { %132 = vmatmul.f32.gmra.mxu3 %v25_v62  ;;  %v95_v11 = vadd.f32 %v94_v10, %v93_v9  ;;  %v778_v9 = vsel %vm232_vm14, 1, %v231_v5 }
  0x2d   :  { %v96_v12 = vrot.slane %v95_v11, 1 }
  0x2f   :  { %v97_v13 = vadd.f32 %v96_v12, %v95_v11 }
  0x31   :  { %126 = vmatmul.f32.gmra.mxu2 %v23_v63 }
  0x9e   :  { %v115_v14 = vpop.f32.mrf.mxu0 }
  0x9f   :  { %v136_v15 = vmul.f32 2.0, %v115_v14 }
  0xa1   :  { %v143_v16 = vsub.f32 %v97_v13, %v136_v15 }
  0xa3   :  { %v150_v1 = vsel %vm60_vm0, %v143_v16, inf }
  0xa4   :  { %v121_v17 = vpop.f32.mrf.mxu2  ;;  %151 = vmin.xlane.f32.xlu0 %v150_v1  ;;  %v277_v1 = vld [vmem:[%s890_s3] sm:$0xff] }
  0xa5   :  { %v138_v0 = vmul.f32 2.0, %v121_v17 }
  0xa6   :  { %v118_v18 = vpop.f32.mrf.mxu0  ;;  %v130_v19 = vpop.f32.mrf.mxu3 }
  0xa7   :  { %v137_v20 = vmul.f32 2.0, %v118_v18  ;;  %v145_v21 = vsub.f32 %v97_v13, %v138_v0  ;;  %v141_v34 = vmul.f32 2.0, %v130_v19  ;;  %v549_v18 = vmov 0.0  }
  0xa9   :  { %v144_v22 = vsub.f32 %v97_v13, %v137_v20  ;;  %v156_v23 = vsel %vm60_vm0, %v145_v21, inf  ;;  %v148_v38 = vsub.f32 %v97_v13, %v141_v34 }
  0xaa   :  { %157 = vmin.xlane.f32.xlu1 %v156_v23 }
  0xab   :  { %v153_v24 = vsel %vm60_vm0, %v144_v22, inf  ;;  %v165_v39 = vsel %vm60_vm0, %v148_v38, inf }
  0xac   :  { %v124_v25 = vpop.f32.mrf.mxu2  ;;  %154 = vmin.xlane.f32.xlu0 %v153_v24  ;;  %v284_v24 = vmul.f32 0.2236068, %v277_v1 }
  0xad   :  { %v139_v26 = vmul.f32 2.0, %v124_v25 }
  0xae   :  { %v133_v27 = vpop.f32.mrf.mxu3 }
  0xaf   :  { %v146_v28 = vsub.f32 %v97_v13, %v139_v26  ;;  %v142_v29 = vmul.f32 2.0, %v133_v27 }
  0xb1   :  { %v159_v30 = vsel %vm60_vm0, %v146_v28, inf  ;;  %v149_v31 = vsub.f32 %v97_v13, %v142_v29  ;;  %v278_v29 = vld [vmem:[%s890_s3 + $0x8] sm:$0xff] }
  0xb2   :  { %160 = vmin.xlane.f32.xlu1 %v159_v30 }
  0xb3   :  { %v169_v35 = vsel %vm168_vm1, %v149_v31, inf }
  0xb4   :  { %v127_v32 = vpop.f32.mrf.mxu2 }
  0xb5   :  { %v140_v33 = vmul.f32 2.0, %v127_v32 }
  0xb7   :  { %v147_v36 = vsub.f32 %v97_v13, %v140_v33  ;;  %v791_v33 = vcvt.s32.f32 %v778_v9 }
  0xb9   :  { %v162_v37 = vsel %vm60_vm0, %v147_v36, inf }
  0xba   :  { %170 = vmin.xlane.f32.xlu1 %v169_v35  ;;  %163 = vmin.xlane.f32.xlu2 %v162_v37  ;;  %v285_v37 = vmul.f32 0.2236068, %v278_v29 }
  0xc2   :  { %166 = vmin.xlane.f32.xlu2 %v165_v39 }
 0x117   :  { %v152_v43 = vpop.xlane.xlu0 %151 }
 0x118   :  { %173 = vst.msk [vmem:[%s889_s4] sm:$0xff] %vm172_vm2, %v152_v43  ;;  %vm184_vm3 = vcmp.eq.f32.partialorder %v143_v16, %v152_v43 }
 0x119   :  { %v191_v44 = vsel %vm184_vm3, %v735_v42, 16.0 }
 0x11a   :  { %v198_v45 = vsel %vm60_vm0, %v191_v44, inf }
 0x11b   :  { %199 = vmin.xlane.f32.xlu0 %v198_v45  ;;  %v27_v45 = vld [vmem:[%s891_s1 + $0x8] sm:$0xff] }
 0x11c   :  { %405 = vmatpush.msra.mxu1 %v27_v45 }
 0x11d   :  { %v158_v46 = vpop.xlane.xlu1 %157 }
 0x11e   :  { %175 = vst.msk [vmem:[%s889_s4 + $0x10] sm:$0xff] %vm172_vm2, %v158_v46  ;;  %vm186_vm4 = vcmp.eq.f32.partialorder %v145_v21, %v158_v46 }
 0x11f   :  { %v155_v47 = vpop.xlane.xlu0 %154  ;;  %v193_v48 = vsel %vm186_vm4, %v735_v42, 16.0 }
 0x120   :  { %174 = vst.msk [vmem:[%s889_s4 + $0x8] sm:$0xff] %vm172_vm2, %v155_v47  ;;  %vm185_vm5 = vcmp.eq.f32.partialorder %v144_v22, %v155_v47  ;;  %v204_v50 = vsel %vm60_vm0, %v193_v48, inf }
 0x121   :  { %v192_v49 = vsel %vm185_vm5, %v735_v42, 16.0 }
 0x122   :  { %v201_v51 = vsel %vm60_vm0, %v192_v49, inf }
 0x123   :  { %205 = vmin.xlane.f32.xlu0 %v204_v50  ;;  %202 = vmin.xlane.f32.xlu2 %v201_v51 }
 0x125   :  { %v161_v52 = vpop.xlane.xlu1 %160 }
 0x126   :  { %176 = vst.msk [vmem:[%s889_s4 + $0x18] sm:$0xff] %vm172_vm2, %v161_v52  ;;  %vm187_vm6 = vcmp.eq.f32.partialorder %v146_v28, %v161_v52 }
 0x127   :  { %v194_v53 = vsel %vm187_vm6, %v735_v42, 16.0 }
 0x128   :  { %v207_v54 = vsel %vm60_vm0, %v194_v53, inf }
 0x129   :  { %208 = vmin.xlane.f32.xlu1 %v207_v54 }
 0x12d   :  { %v171_v55 = vpop.xlane.xlu1 %170  ;;  %v164_v56 = vpop.xlane.xlu2 %163 }
 0x12e   :  { %180 = vst.msk [vmem:[%s889_s4 + $0x30] sm:$0x3] %vm179_vm7, %v171_v55  ;;  %vm190_vm8 = vcmp.eq.f32.partialorder %v149_v31, %v171_v55  ;;  %vm188_vm9 = vcmp.eq.f32.partialorder %v147_v36, %v164_v56 }
 0x12f   :  { %177 = vst.msk [vmem:[%s889_s4 + $0x20] sm:$0xff] %vm172_vm2, %v164_v56  ;;  %v197_v57 = vsel %vm190_vm8, %v735_v42, 16.0  ;;  %v195_v58 = vsel %vm188_vm9, %v735_v42, 16.0  ;;  %vm326_vm8 = vcmask 31744  }
 0x130   :  { %v216_v59 = vsel %vm168_vm1, %v197_v57, inf  ;;  %v210_v60 = vsel %vm60_vm0, %v195_v58, inf }
 0x131   :  { %217 = vmin.xlane.f32.xlu1 %v216_v59  ;;  %211 = vmin.xlane.f32.xlu2 %v210_v60 }
 0x135   :  { %v167_v61 = vpop.xlane.xlu2 %166 }
 0x136   :  { %178 = vst.msk [vmem:[%s889_s4 + $0x28] sm:$0xff] %vm172_vm2, %v167_v61  ;;  %vm189_vm10 = vcmp.eq.f32.partialorder %v148_v38, %v167_v61  ;;  %v279_v38 = vld [vmem:[%s890_s3 + $0x10] sm:$0xff] }
 0x137   :  { %v196_v62 = vsel %vm189_vm10, %v735_v42, 16.0  ;;  %v286_v49 = vmul.f32 0.2236068, %v279_v38 }
 0x138   :  { %v213_v63 = vsel %vm60_vm0, %v196_v62, inf }
 0x139   :  { %214 = vmin.xlane.f32.xlu0 %v213_v63  ;;  %v280_v63 = vld [vmem:[%s890_s3 + $0x18] sm:$0xff] }
 0x18e   :  { %v200_v6 = vpop.xlane.xlu0 %199 }
 0x18f   :  { %vm511_vm15 = vcmp.lt.s32.totalorder %v200_v6, 0  ;;  %v512_v7 = vceil.f32 %v200_v6  ;;  %v513_v8 = vfloor.f32 %v200_v6 }
 0x191   :  { %v514_v10 = vsel %vm511_vm15, %v512_v7, %v513_v8 }
 0x192   :  { %v515_v11 = vcvt.f32.s32 %v514_v10 }
 0x194   :  { %v235_v12 = vand.u32 %v515_v11, %v778_v9 }
 0x196   :  { %vm242_vm1 = vcmp.ne.s32.totalorder %v235_v12, 0  ;;  %v203_v13 = vpop.xlane.xlu2 %202  ;;  %v206_v14 = vpop.xlane.xlu0 %205  ;;  %v287_v12 = vmul.f32 0.2236068, %v280_v63 }
 0x197   :  { %vm516_vm2 = vcmp.lt.s32.totalorder %v203_v13, 0  ;;  %v517_v15 = vceil.f32 %v203_v13  ;;  %v518_v16 = vfloor.f32 %v203_v13  ;;  %vm521_vm3 = vcmp.lt.s32.totalorder %v206_v14, 0 }
 0x198   :  { %v522_v17 = vceil.f32 %v206_v14  ;;  %v523_v0 = vfloor.f32 %v206_v14  ;;  %v444_v19 = vsel %vm242_vm1, 1.0, %v549_v18 }
 0x199   :  { %v519_v20 = vsel %vm516_vm2, %v517_v15, %v518_v16  ;;  %v263_v21 = vmul.f32 2.0, %v444_v19  ;;  %v281_v15 = vld [vmem:[%s890_s3 + $0x20] sm:$0xff] }
 0x19a   :  { %v520_v22 = vcvt.f32.s32 %v519_v20  ;;  %v524_v23 = vsel %vm521_vm3, %v522_v17, %v523_v0  ;;  %v283_v17 = vld [vmem:[%s890_s3 + $0x30] sm:$0x3] }
 0x19b   :  { %v525_v25 = vcvt.f32.s32 %v524_v23  ;;  %v451_v26 = vadd.f32 -1.0, %v263_v21 }
 0x19c   :  { %v236_v27 = vand.u32 %v520_v22, %v778_v9  ;;  %v209_v28 = vpop.xlane.xlu1 %208  ;;  %v288_v22 = vmul.f32 0.2236068, %v281_v15 }
 0x19d   :  { %v237_v30 = vand.u32 %v525_v25, %v778_v9  ;;  %vm526_vm4 = vcmp.lt.s32.totalorder %v209_v28, 0  ;;  %v527_v31 = vceil.f32 %v209_v28  ;;  %v528_v32 = vfloor.f32 %v209_v28 }
 0x19e   :  { %vm243_vm5 = vcmp.ne.s32.totalorder %v236_v27, 0  ;;  %v291_v34 = vadd.f32 %v451_v26, %v284_v24  ;;  %v290_v27 = vmul.f32 0.2236068, %v283_v17 }
 0x19f   :  { %vm244_vm6 = vcmp.ne.s32.totalorder %v237_v30, 0  ;;  %v529_v35 = vsel %vm526_vm4, %v527_v31, %v528_v32  ;;  %v445_v36 = vsel %vm243_vm5, 1.0, %v549_v18 }
 0x1a0   :  { %v530_v39 = vcvt.f32.s32 %v529_v35  ;;  %vm298_vm7 = vcmp.ge.f32.partialorder %v291_v34, 0.0  ;;  %v264_v40 = vmul.f32 2.0, %v445_v36  ;;  %v446_v41 = vsel %vm244_vm6, 1.0, %v549_v18 }
 0x1a1   :  { %v458_v43 = vsel %vm298_vm7, 1.0, %v549_v18  ;;  %v265_v44 = vmul.f32 2.0, %v446_v41  ;;  %vm345_vm6 = vcmask 25600  }
 0x1a2   :  { %v238_v46 = vand.u32 %v530_v39, %v778_v9  ;;  %v319_v47 = vmul.f32 %v458_v43, %v791_v33  ;;  %v452_v48 = vadd.f32 -1.0, %v264_v40 }
 0x1a3   :  { %v453_v50 = vadd.f32 -1.0, %v265_v44 }
 0x1a4   :  { %vm245_vm9 = vcmp.ne.s32.totalorder %v238_v46, 0  ;;  %v327_v51 = vsel %vm326_vm8, %v319_v47, 0.0  ;;  %v218_v52 = vpop.xlane.xlu1 %217  ;;  %v212_v53 = vpop.xlane.xlu2 %211  ;;  %v292_v54 = vadd.f32 %v452_v48, %v285_v37  ;;  %v282_v37 = vld [vmem:[%s890_s3 + $0x28] sm:$0xff] }
 0x1a5   :  { %328 = vadd.xlane.f32.xlu2 %v327_v51  ;;  %vm541_vm10 = vcmp.lt.s32.totalorder %v218_v52, 0  ;;  %v542_v55 = vceil.f32 %v218_v52  ;;  %v543_v56 = vfloor.f32 %v218_v52  ;;  %vm531_vm11 = vcmp.lt.s32.totalorder %v212_v53, 0 }
 0x1a6   :  { %v532_v57 = vceil.f32 %v212_v53  ;;  %v533_v58 = vfloor.f32 %v212_v53  ;;  %vm299_vm12 = vcmp.ge.f32.partialorder %v292_v54, 0.0  ;;  %v293_v59 = vadd.f32 %v453_v50, %v286_v49  ;;  %v26_v53 = vld [vmem:[%s891_s1] sm:$0xff] }
 0x1a7   :  { %v544_v60 = vsel %vm541_vm10, %v542_v55, %v543_v56  ;;  %v459_v61 = vsel %vm299_vm12, 1.0, %v549_v18  ;;  %v447_v62 = vsel %vm245_vm9, 1.0, %v549_v18  ;;  %v289_v43 = vmul.f32 0.2236068, %v282_v37  ;;  %406 = vmatpush.msra.mxu1 %v26_v53 }
 0x1a8   :  { %v545_v2 = vcvt.f32.s32 %v544_v60  ;;  %v534_v3 = vsel %vm531_vm11, %v532_v57, %v533_v58  ;;  %v320_v4 = vmul.f32 %v459_v61, %v791_v33  ;;  %vm300_vm13 = vcmp.ge.f32.partialorder %v293_v59, 0.0 }
 0x1a9   :  { %v535_v5 = vcvt.f32.s32 %v534_v3  ;;  %v460_v6 = vsel %vm300_vm13, 1.0, %v549_v18  ;;  %v266_v7 = vmul.f32 2.0, %v447_v62 }
 0x1aa   :  { %v241_v8 = vand.u32 %v545_v2, %v778_v9  ;;  %v330_v10 = vsel %vm326_vm8, %v320_v4, 0.0  ;;  %v321_v11 = vmul.f32 %v460_v6, %v791_v33 }
 0x1ab   :  { %v239_v13 = vand.u32 %v535_v5, %v778_v9  ;;  %331 = vadd.xlane.f32.xlu0 %v330_v10  ;;  %v454_v14 = vadd.f32 -1.0, %v266_v7 }
 0x1ac   :  { %vm248_vm14 = vcmp.ne.s32.totalorder %v241_v8, 0  ;;  %v333_v16 = vsel %vm326_vm8, %v321_v11, 0.0  ;;  %v215_v1 = vpop.xlane.xlu0 %214 }
 0x1ad   :  { %vm246_vm15 = vcmp.ne.s32.totalorder %v239_v13, 0  ;;  %334 = vadd.xlane.f32.xlu1 %v333_v16  ;;  %vm536_vm1 = vcmp.lt.s32.totalorder %v215_v1, 0  ;;  %v537_v0 = vceil.f32 %v215_v1  ;;  %v538_v19 = vfloor.f32 %v215_v1 }
 0x1ae   :  { %v294_v20 = vadd.f32 %v454_v14, %v287_v12  ;;  %v448_v21 = vsel %vm246_vm15, 1.0, %v549_v18  ;;  %v450_v23 = vsel %vm248_vm14, 1.0, %v549_v18 }
 0x1af   :  { %v539_v24 = vsel %vm536_vm1, %v537_v0, %v538_v19  ;;  %v267_v25 = vmul.f32 2.0, %v448_v21  ;;  %v269_v26 = vmul.f32 2.0, %v450_v23 }
 0x1b0   :  { %v540_v28 = vcvt.f32.s32 %v539_v24  ;;  %vm301_vm2 = vcmp.ge.f32.partialorder %v294_v20, 0.0 }
 0x1b1   :  { %v461_v29 = vsel %vm301_vm2, 1.0, %v549_v18  ;;  %v455_v30 = vadd.f32 -1.0, %v267_v25  ;;  %v457_v31 = vadd.f32 -1.0, %v269_v26 }
 0x1b2   :  { %v240_v32 = vand.u32 %v540_v28, %v778_v9  ;;  %v322_v34 = vmul.f32 %v461_v29, %v791_v33 }
 0x1b3   :  { %v295_v35 = vadd.f32 %v455_v30, %v288_v22  ;;  %v297_v36 = vadd.f32 %v457_v31, %v290_v27 }
 0x1b4   :  { %vm247_vm3 = vcmp.ne.s32.totalorder %v240_v32, 0  ;;  %v336_v38 = vsel %vm326_vm8, %v322_v34, 0.0 }
 0x1b5   :  { %337 = vadd.xlane.f32.xlu2 %v336_v38  ;;  %vm302_vm4 = vcmp.ge.f32.partialorder %v295_v35, 0.0  ;;  %vm304_vm5 = vcmp.ge.f32.partialorder %v297_v36, 0.0  ;;  %v449_v39 = vsel %vm247_vm3, 1.0, %v549_v18 }
 0x1b6   :  { %v462_v40 = vsel %vm302_vm4, 1.0, %v549_v18  ;;  %v464_v9 = vsel %vm304_vm5, 1.0, %v549_v18  ;;  %v268_v41 = vmul.f32 2.0, %v449_v39 }
 0x1b7   :  { %v323_v44 = vmul.f32 %v462_v40, %v791_v33  ;;  %v325_v45 = vmul.f32 %v464_v9, %v791_v33 }
 0x1b8   :  { %v456_v46 = vadd.f32 -1.0, %v268_v41 }
 0x1b9   :  { %v339_v47 = vsel %vm326_vm8, %v323_v44, 0.0  ;;  %v346_v48 = vsel %vm345_vm6, %v325_v45, 0.0 }
 0x1ba   :  { %340 = vadd.xlane.f32.xlu0 %v339_v47  ;;  %v296_v49 = vadd.f32 %v456_v46, %v289_v43 }
 0x1bc   :  { %vm303_vm7 = vcmp.ge.f32.partialorder %v296_v49, 0.0 }
 0x1bd   :  { %347 = vadd.xlane.f32.xlu2 %v346_v48  ;;  %v463_v50 = vsel %vm303_vm7, 1.0, %v549_v18 }
 0x1be   :  { %v324_v51 = vmul.f32 %v463_v50, %v791_v33 }
 0x1c0   :  { %v342_v52 = vsel %vm326_vm8, %v324_v51, 0.0 }
 0x1c1   :  { %343 = vadd.xlane.f32.xlu1 %v342_v52 }
 0x218   :  { %v329_v54 = vpop.xlane.xlu2 %328 }
 0x219   :  { %vm349_vm9 = vcmp.eq.f32.partialorder %v735_v42, %v329_v54 }
 0x21a   :  { %v465_v55 = vsel %vm349_vm9, 1.0, %v549_v18 }
 0x21b   :  { %472 = vmatmul.msk.f32.vlgmr.msra.gmra.mxu1 %vm60_vm0, %v465_v55 }
 0x21e   :  { %v332_v56 = vpop.xlane.xlu0 %331 }
 0x21f   :  { %vm350_vm10 = vcmp.eq.f32.partialorder %v735_v42, %v332_v56 }
 0x220   :  { %v466_v33 = vsel %vm350_vm10, 1.0, %v549_v18  ;;  %v335_v57 = vpop.xlane.xlu1 %334 }
 0x221   :  { %vm351_vm8 = vcmp.eq.f32.partialorder %v735_v42, %v335_v57 }
 0x222   :  { %v467_v58 = vsel %vm351_vm8, 1.0, %v549_v18 }
 0x223   :  { %473 = vmatmul.msk.f32.gmra.mxu1 %vm60_vm0, %v466_v33 }
 0x228   :  { %v338_v59 = vpop.xlane.xlu2 %337 }
 0x229   :  { %vm352_vm11 = vcmp.eq.f32.partialorder %v735_v42, %v338_v59 }
 0x22a   :  { %v468_v60 = vsel %vm352_vm11, 1.0, %v549_v18 }
 0x22b   :  { %474 = vmatmul.msk.f32.gmra.mxu1 %vm60_vm0, %v467_v58 }
 0x22d   :  { %v341_v61 = vpop.xlane.xlu0 %340 }
 0x22e   :  { %vm353_vm12 = vcmp.eq.f32.partialorder %v735_v42, %v341_v61 }
 0x22f   :  { %v469_v62 = vsel %vm353_vm12, 1.0, %v549_v18 }
 0x230   :  { %v348_v3 = vpop.xlane.xlu2 %347 }
 0x231   :  { %vm355_vm14 = vcmp.eq.f32.partialorder %v735_v42, %v348_v3 }
 0x232   :  { %v471_v4 = vsel %vm355_vm14, 1.0, %v549_v18 }
 0x233   :  { %475 = vmatmul.msk.f32.gmra.mxu1 %vm60_vm0, %v468_v60 }
 0x234   :  { %v344_v63 = vpop.xlane.xlu1 %343 }
 0x235   :  { %vm354_vm13 = vcmp.eq.f32.partialorder %v735_v42, %v344_v63 }
 0x236   :  { %v470_v2 = vsel %vm354_vm13, 1.0, %v549_v18 }
 0x23b   :  { %476 = vmatmul.msk.f32.gmra.mxu1 %vm60_vm0, %v469_v62 }
 0x243   :  { %477 = vmatmul.msk.f32.gmra.mxu1 %vm60_vm0, %v470_v2 }
 0x24b   :  { %478 = vmatmul.msk.f32.gmra.mxu1 %vm60_vm0, %v471_v4 }
 0x298   :  { %v408_v5 = vpop.f32.mrf.mxu1 }
 0x299   :  { %429 = vst [vmem:[%s892_s5] sm:$0xff] %v408_v5 }
 0x2a0   :  { %v411_v6 = vpop.f32.mrf.mxu1 }
 0x2a1   :  { %430 = vst [vmem:[%s892_s5 + $0x8] sm:$0xff] %v411_v6 }
 0x2a8   :  { %v414_v7 = vpop.f32.mrf.mxu1 }
 0x2a9   :  { %431 = vst [vmem:[%s892_s5 + $0x10] sm:$0xff] %v414_v7 }
 0x2b0   :  { %v417_v42 = vpop.f32.mrf.mxu1 }
 0x2b1   :  { %432 = vst [vmem:[%s892_s5 + $0x18] sm:$0xff] %v417_v42 }
 0x2b8   :  { %v420_v18 = vpop.f32.mrf.mxu1 }
 0x2b9   :  { %433 = vst [vmem:[%s892_s5 + $0x20] sm:$0xff] %v420_v18 }
 0x2c0   :  { %v423_v8 = vpop.f32.mrf.mxu1 }
 0x2c1   :  { %434 = vst [vmem:[%s892_s5 + $0x28] sm:$0xff] %v423_v8 }
 0x2c8   :  { %v426_v10 = vpop.f32.mrf.mxu1 }
 0x2c9   :  { %435 = vst [vmem:[%s892_s5 + $0x30] sm:$0x3] %v426_v10 }

</bundles_post_ra>
